<compile_context>
chip_gen: v6e
topology: v6e:2x2x1
jax: 0.10.0
libtpu: 0.0.40
codegen_flags: <defaults>
</compile_context>

<pallas_src>
import jax
import jax.numpy as jnp
from jax import lax
from jax.experimental import pallas as pl
from jax.experimental.pallas import tpu as pltpu

IN_FEATURES = 2048  # fixed by the module definition


def ranking_kernel(x_ref, wt_ref, o_ref):
    """x_ref: (B, 2048) f32, wt_ref: (2048, k) bf16 (pre-transposed weight).

    Single MXU matmul on the canonical (((1,),(0,)),((),())) contraction with
    f32 accumulation, then a whole-tensor Frobenius normalization done with
    rsqrt + multiply (matches torch.div(x, torch.linalg.norm(x)) semantics).
    """
    x_bf16 = x_ref[...].astype(jnp.bfloat16)  # ~16 vregs, negligible VPU work
    y = lax.dot_general(
        x_bf16,
        wt_ref[...],
        dimension_numbers=(((1,), (0,)), ((), ())),  # straight [B,K]x[K,k]
        preferred_element_type=jnp.float32,           # f32 accumulation
    )
    # Whole-tensor 2-norm, like torch.linalg.norm(y) with no dim argument.
    inv_norm = lax.rsqrt(jnp.sum(y * y))
    o_ref[...] = (y * inv_norm).astype(o_ref.dtype)


def prepare_weight(w_linear_f32):
    """One-time init-path conversion of the PyTorch Linear weight.

    (k, 2048) f32  ->  (2048, k) bf16.  Done once when the module is built,
    so there is zero recurring transpose / cast cost per forward call.
    """
    return jnp.asarray(w_linear_f32).T.astype(jnp.bfloat16)


@jax.jit
def ranking_forward(x, wt):
    """x: (B, 2048) f32, wt: (2048, k) bf16 (output of prepare_weight)."""
    B, K = x.shape
    K2, k_out = wt.shape
    assert K == K2 == IN_FEATURES
    # k a multiple of 128 keeps the (B, k) result store lane-dense (unmasked).
    assert k_out % 128 == 0, "pad k to a multiple of 128 for lane-dense stores"

    flops = 2 * B * k_out * K
    bytes_accessed = (
        x.size * x.dtype.itemsize
        + wt.size * wt.dtype.itemsize
        + B * k_out * x.dtype.itemsize
    )

    return pl.pallas_call(
        ranking_kernel,
        out_shape=jax.ShapeDtypeStruct((B, k_out), x.dtype),
        in_specs=[
            pl.BlockSpec(memory_space=pltpu.MemorySpace.VMEM),
            pl.BlockSpec(memory_space=pltpu.MemorySpace.VMEM),
        ],
        out_specs=pl.BlockSpec(memory_space=pltpu.MemorySpace.VMEM),
        cost_estimate=pl.CostEstimate(
            flops=flops, transcendentals=1, bytes_accessed=bytes_accessed
        ),
    )(x, wt)


if __name__ == "__main__":
    key = jax.random.PRNGKey(0)
    kx, kw = jax.random.split(key)

    B = 8      # batch
    k = 128    # ranking dimension (Linear output features)

    x = jax.random.normal(kx, (B, IN_FEATURES), dtype=jnp.float32)
    w = jax.random.normal(kw, (k, IN_FEATURES), dtype=jnp.float32) * 0.02

    wt = prepare_weight(w)          # (2048, k) bf16, one-time init cost
    out = ranking_forward(x, wt)
    out = jax.block_until_ready(out)
    assert out.shape == (B, k)

    # Reference 1: matching precision (bf16 inputs, f32 accumulate) -- tight.
    xb = x.astype(jnp.bfloat16).astype(jnp.float32)
    wb = wt.astype(jnp.float32)
    y_m = xb @ wb
    ref_m = y_m / jnp.linalg.norm(y_m)
    assert jnp.allclose(out, ref_m, atol=1e-4, rtol=1e-3), \
        "mismatch vs matching-precision reference"

    # Reference 2: original pure-f32 module semantics -- loose (bf16 weight).
    y_f = x @ w.T
    ref_f = y_f / jnp.linalg.norm(y_f)
    assert jnp.allclose(out, ref_f, atol=1e-3, rtol=2e-2), \
        "mismatch vs f32 reference"

    print("KERNEL_OK")
</pallas_src>

<mosaic_0001>
module attributes {stable_mosaic.version = 11 : i64} {
  func.func @ranking_kernel(%arg0: memref<8x2048xf32, #tpu.memory_space<vmem>>, %arg1: memref<2048x128xbf16, #tpu.memory_space<vmem>>, %arg2: memref<8x128xf32, #tpu.memory_space<vmem>>) attributes {dimension_semantics = [], scalar_prefetch = 0 : i64, scratch_operands = 0 : i64, tpu.core_type = #tpu.core_type<tc>} {
    %c0 = arith.constant 0 : index
    %c0_0 = arith.constant 0 : index
    %0 = vector.load %arg0[%c0, %c0_0] : memref<8x2048xf32, #tpu.memory_space<vmem>>, vector<8x2048xf32>
    %1 = arith.truncf %0 : vector<8x2048xf32> to vector<8x2048xbf16>
    %c0_1 = arith.constant 0 : index
    %c0_2 = arith.constant 0 : index
    %2 = vector.load %arg1[%c0_1, %c0_2] : memref<2048x128xbf16, #tpu.memory_space<vmem>>, vector<2048x128xbf16>
    %cst = arith.constant dense<0.000000e+00> : vector<8x128xf32>
    %3 = tpu.matmul %1, %2, %cst {dimension_numbers = #tpu.dot_dimension_numbers<[1], [0], [0], [1], [0, 0, 1, 1], [], []>} : vector<8x2048xbf16>, vector<2048x128xbf16>, vector<8x128xf32> -> vector<8x128xf32>
    %4 = arith.mulf %3, %3 : vector<8x128xf32>
    %5 = vector.shape_cast %4 : vector<8x128xf32> to vector<1x8x128xf32>
    %cst_3 = arith.constant dense<0.000000e+00> : vector<1xf32>
    %6 = vector.multi_reduction <add>, %5, %cst_3 [1, 2] : vector<1x8x128xf32> to vector<1xf32>
    %7 = vector.shape_cast %6 : vector<1xf32> to vector<1x1x1xf32>
    %8 = vector.extract %7[0, 0, 0] : f32 from vector<1x1x1xf32>
    %9 = math.rsqrt %8 : f32
    %10 = vector.broadcast %9 : f32 to vector<8x128xf32>
    %11 = arith.mulf %3, %10 : vector<8x128xf32>
    %c0_4 = arith.constant 0 : index
    %c0_5 = arith.constant 0 : index
    %12 = vector.load %arg2[%c0_4, %c0_5] : memref<8x128xf32, #tpu.memory_space<vmem>>, vector<8x128xf32>
    tpu.vector_store %arg2[%c0_4, %c0_5], %11 {strides = array<i32>} : memref<8x128xf32, #tpu.memory_space<vmem>>, vector<8x128xf32>,
    return
  }
}

</mosaic_0001>

<bundles_post_ra>
// kernel: ranking_forward.1
= control target key start
LH: loop header
LB: loop body
LE: loop exit
PB: predicated region body
PF: predicated region fallthrough
CT: control target
= control target key end

     0   :  { %7 = vsyncpa [#allocation3], 0  ;;  %s1985_s0 = inlined_call_operand.hbm [shape: f32[8,2048], index: 0, kind: input, shape index: {}]   ;;  %s1986_s1 = inlined_call_operand.hbm [shape: bf16[2048,128], index: 1, kind: input, shape index: {}]   ;;  %s1987_s2 = inlined_call_operand.hbm [shape: f32[8,128], index: 2, kind: output, shape index: {}]  }
   0x1   :  { %8 = vsyncpa [#allocation6], 0 }
   0x2   :  { %9 = vsyncpa [#allocation4], 0  ;;  %s1956_s9 = smov [#allocation2]   ;;  %s1957_s11 = smov [#allocation5]  }
   0x3   :  { %s16_s10 = sshll.u32 %s1956_s9, 4  ;;  %s25_s12 = sshll.u32 %s1957_s11, 4  ;;  %s17_s10 = int_to_ptr.vmem [resolvable:$true] %s16_s10  ;;  %s26_s12 = int_to_ptr.vmem [resolvable:$true] %s25_s12 }
   0x4   :  { %s1898_s13 = scalar_lea.vmem %s17_s10, 2048  ;;  %p1903_p1 = scmp.lt.s32.totalorder %s17_s10, %s17_s10 }
   0x5   :  { %p1899_p0 = scmp.ne.s32.totalorder %s17_s10, %s1898_s13  ;;  %p1904_p2 = scmp.lt.s32.totalorder %s1898_s13, %s1898_s13 }
   0x7   :  { %p1905_p3 = por %p1904_p2, %p1903_p1 }
   0x9   :  { %p1906_p4 = pnand %p1905_p3, %p1899_p0 }
   0xb   :  { %1909 = shalt.err (!%p1906_p4)
}
   0xc   :  { %19 = dma.hbm_to_vmem [thread:$0]  %s1985_s0, 2048, %s17_s10, [#allocation3]  }
   0xd   :  { %s1918_s16 = scalar_lea.vmem %s26_s12, 16384  ;;  %p1923_p6 = scmp.lt.s32.totalorder %s26_s12, %s26_s12 }
   0xe   :  { %p1919_p5 = scmp.ne.s32.totalorder %s26_s12, %s1918_s16  ;;  %p1924_p7 = scmp.lt.s32.totalorder %s1918_s16, %s1918_s16 }
  0x10   :  { %p1925_p8 = por %p1924_p7, %p1923_p6 }
  0x12   :  { %p1926_p9 = pnand %p1925_p8, %p1919_p5 }
  0x14   :  { %1929 = shalt.err (!%p1926_p9)
}
  0x15   :  { %s1958_s17 = smov 64   ;;  %s1959_s18 = smov 4  }
  0x16   :  { %31 = dma.hbm_to_vmem [thread:$0]  %s1986_s1, 16384, %s26_s12, [#allocation6], %s1958_s17, %s1958_s17, %s1959_s18  }
  0x17   :  { %1950 = dma.done.wait [#allocation3], 2048  }
  0x18   :  { %1951 = vsyncadd [#allocation3], 4294965248 }
  0x19   :  { %1952 = dma.done.wait [#allocation6], 16384  }
  0x1a   :  { %1953 = vsyncadd [#allocation6], 4294950912  ;;  %v1760_v0 = vld [vmem:[#allocation5 + $0x78] sm:$0xff]   ;;  %v1764_v4 = vld [vmem:[#allocation5 + $0x70] sm:$0xff]   ;;  %s1960_s1 = smov [#allocation7]  }
  0x1b   :  { %v1761_v1 = vld [vmem:[#allocation5 + $0xf8] sm:$0xff]   ;;  %1575 = vmatprep.subr.bf16.mxu0 %v1760_v0  ;;  %v1765_v5 = vld [vmem:[#allocation5 + $0xf0] sm:$0xff]   ;;  %v1768_v8 = vld [vmem:[#allocation5 + $0x68] sm:$0xff]   ;;  %s1437_s21 = sshll.u32 %s1960_s1, 4  ;;  %s1438_s21 = int_to_ptr.vmem [resolvable:$true] %s1437_s21 }
  0x1c   :  { %v1762_v2 = vld [vmem:[#allocation5 + $0x38] sm:$0xff]   ;;  %1597 = vmatprep.subr.bf16.mxu1 %v1761_v1  ;;  %v1766_v6 = vld [vmem:[#allocation5 + $0x30] sm:$0xff]   ;;  %v1769_v9 = vld [vmem:[#allocation5 + $0xe8] sm:$0xff]   ;;  %s1930_s23 = scalar_lea.vmem %s1438_s21, 128  ;;  %p1935_p11 = scmp.lt.s32.totalorder %s1438_s21, %s1438_s21 }
  0x1d   :  { %v1763_v3 = vld [vmem:[#allocation5 + $0xb8] sm:$0xff]   ;;  %1576 = vmatpush3.bf16.msra.mxu0 %v1762_v2  ;;  %v1767_v7 = vld [vmem:[#allocation5 + $0xb0] sm:$0xff]   ;;  %v1770_v10 = vld [vmem:[#allocation5 + $0x28] sm:$0xff]   ;;  %p1931_p10 = scmp.ne.s32.totalorder %s1438_s21, %s1930_s23  ;;  %p1936_p12 = scmp.lt.s32.totalorder %s1930_s23, %s1930_s23 }
  0x1e   :  { %1598 = vmatpush3.bf16.msra.mxu1 %v1763_v3  ;;  %1577 = vmatprep.subr.bf16.mxu0 %v1764_v4  ;;  %v1771_v11 = vld [vmem:[#allocation5 + $0xa8] sm:$0xff]   ;;  %v1772_v12 = vld [vmem:[#allocation5 + $0x60] sm:$0xff]   ;;  %v1776_v16 = vld [vmem:[#allocation5 + $0x58] sm:$0xff]  }
  0x1f   :  { %1599 = vmatprep.subr.bf16.mxu1 %v1765_v5  ;;  %v1773_v13 = vld [vmem:[#allocation5 + $0xe0] sm:$0xff]   ;;  %v1777_v17 = vld [vmem:[#allocation5 + $0xd8] sm:$0xff]   ;;  %v1780_v20 = vld [vmem:[#allocation5 + $0x50] sm:$0xff]   ;;  %p1937_p13 = por %p1936_p12, %p1935_p11 }
  0x20   :  { %v1774_v14 = vld [vmem:[#allocation5 + $0x20] sm:$0xff]   ;;  %v1778_v18 = vld [vmem:[#allocation5 + $0x18] sm:$0xff]   ;;  %v1781_v21 = vld [vmem:[#allocation5 + $0xd0] sm:$0xff]  }
  0x21   :  { %1578 = vmatpush3.bf16.msra.mxu0 %v1766_v6  ;;  %v1775_v15 = vld [vmem:[#allocation5 + $0xa0] sm:$0xff]   ;;  %v1779_v19 = vld [vmem:[#allocation5 + $0x98] sm:$0xff]   ;;  %v1782_v22 = vld [vmem:[#allocation5 + $0x10] sm:$0xff]   ;;  %p1938_p0 = pnand %p1937_p13, %p1931_p10 }
  0x22   :  { %1600 = vmatpush3.bf16.msra.mxu1 %v1767_v7  ;;  %1579 = vmatprep.subr.bf16.mxu0 %v1768_v8  ;;  %v1783_v23 = vld [vmem:[#allocation5 + $0x90] sm:$0xff]   ;;  %v1784_v24 = vld [vmem:[#allocation5 + $0x48] sm:$0xff]   ;;  %v1788_v28 = vld [vmem:[#allocation5 + $0x40] sm:$0xff]  }
  0x23   :  { %1601 = vmatprep.subr.bf16.mxu1 %v1769_v9  ;;  %v1785_v25 = vld [vmem:[#allocation5 + $0xc8] sm:$0xff]   ;;  %v1789_v29 = vld [vmem:[#allocation5 + $0xc0] sm:$0xff]   ;;  %v42_v33 = vld [vmem:[#allocation2 + $0x18] sm:$0xff] }
  0x24   :  { %v1786_v26 = vld [vmem:[#allocation5 + $0x8] sm:$0xff]   ;;  %v1790_v30 = vld [vmem:[#allocation5] sm:$0xff]   ;;  %v58_v36 = vpack.c.bf16 %v42_v33, %v42_v33  ;;  %v41_v38 = vld [vmem:[#allocation2 + $0x10] sm:$0xff] }
  0x25   :  { %1580 = vmatpush3.bf16.msra.mxu0 %v1770_v10  ;;  %v1787_v27 = vld [vmem:[#allocation5 + $0x88] sm:$0xff]   ;;  %v1791_v31 = vld [vmem:[#allocation5 + $0x80] sm:$0xff]   ;;  %v57_v39 = vpack.c.bf16 %v41_v38, %v41_v38  ;;  %v1792_v40 = vld [vmem:[#allocation5 + $0x178] sm:$0xff]  }
  0x26   :  { %1602 = vmatpush3.bf16.msra.mxu1 %v1771_v11  ;;  %1581 = vmatprep.subr.bf16.mxu0 %v1772_v12  ;;  %v40_v32 = vld [vmem:[#allocation2 + $0x8] sm:$0xff]  ;;  %v39_v34 = vld [vmem:[#allocation2] sm:$0xff]  ;;  %v1793_v41 = vld [vmem:[#allocation5 + $0x1f8] sm:$0xff]  }
  0x27   :  { %1603 = vmatprep.subr.bf16.mxu1 %v1773_v13  ;;  %v56_v35 = vpack.c.bf16 %v40_v32, %v40_v32  ;;  %v55_v37 = vpack.c.bf16 %v39_v34, %v39_v34  ;;  %1167 = vmatprep.mubr.bf16.mxu1 %v58_v36  ;;  %v1794_v42 = vld [vmem:[#allocation5 + $0x138] sm:$0xff]   ;;  %v1796_v44 = vld [vmem:[#allocation5 + $0x170] sm:$0xff]   ;;  %v1800_v48 = vld [vmem:[#allocation5 + $0x168] sm:$0xff]  }
  0x28   :  { %v1795_v43 = vld [vmem:[#allocation5 + $0x1b8] sm:$0xff]   ;;  %v1797_v45 = vld [vmem:[#allocation5 + $0x1f0] sm:$0xff]   ;;  %v1801_v49 = vld [vmem:[#allocation5 + $0x1e8] sm:$0xff]  }
  0x29   :  { %1582 = vmatpush3.bf16.msra.mxu0 %v1774_v14  ;;  %1127 = vmatprep.mubr.bf16.mxu0 %v56_v35  ;;  %v1798_v46 = vld [vmem:[#allocation5 + $0x130] sm:$0xff]   ;;  %v1802_v50 = vld [vmem:[#allocation5 + $0x128] sm:$0xff]   ;;  %v1804_v52 = vld [vmem:[#allocation5 + $0x160] sm:$0xff]  }
  0x2a   :  { %1604 = vmatpush3.bf16.msra.mxu1 %v1775_v15  ;;  %1583 = vmatprep.subr.bf16.mxu0 %v1776_v16  ;;  %v1799_v47 = vld [vmem:[#allocation5 + $0x1b0] sm:$0xff]   ;;  %v1803_v51 = vld [vmem:[#allocation5 + $0x1a8] sm:$0xff]   ;;  %v1805_v53 = vld [vmem:[#allocation5 + $0x1e0] sm:$0xff]  }
  0x2b   :  { %1605 = vmatprep.subr.bf16.mxu1 %v1777_v17  ;;  %v1806_v54 = vld [vmem:[#allocation5 + $0x120] sm:$0xff]   ;;  %v1808_v56 = vld [vmem:[#allocation5 + $0x158] sm:$0xff]   ;;  %v1812_v60 = vld [vmem:[#allocation5 + $0x150] sm:$0xff]  }
  0x2c   :  { %v1807_v55 = vld [vmem:[#allocation5 + $0x1a0] sm:$0xff]   ;;  %v1809_v57 = vld [vmem:[#allocation5 + $0x1d8] sm:$0xff]   ;;  %v1813_v61 = vld [vmem:[#allocation5 + $0x1d0] sm:$0xff]  }
  0x2d   :  { %1584 = vmatpush3.bf16.msra.mxu0 %v1778_v18  ;;  %v1810_v58 = vld [vmem:[#allocation5 + $0x118] sm:$0xff]   ;;  %v1814_v62 = vld [vmem:[#allocation5 + $0x110] sm:$0xff]   ;;  %v1816_v0 = vld [vmem:[#allocation5 + $0x148] sm:$0xff]  }
  0x2e   :  { %1606 = vmatpush3.bf16.msra.mxu1 %v1779_v19  ;;  %1585 = vmatprep.subr.bf16.mxu0 %v1780_v20  ;;  %v1811_v59 = vld [vmem:[#allocation5 + $0x198] sm:$0xff]   ;;  %v1815_v63 = vld [vmem:[#allocation5 + $0x190] sm:$0xff]   ;;  %v1817_v1 = vld [vmem:[#allocation5 + $0x1c8] sm:$0xff]  }
  0x2f   :  { %1607 = vmatprep.subr.bf16.mxu1 %v1781_v21  ;;  %v1818_v2 = vld [vmem:[#allocation5 + $0x108] sm:$0xff]   ;;  %v1820_v4 = vld [vmem:[#allocation5 + $0x140] sm:$0xff]   ;;  %v46_v9 = vld [vmem:[#allocation2 + $0x38] sm:$0xff] }
  0x30   :  { %v1819_v3 = vld [vmem:[#allocation5 + $0x188] sm:$0xff]   ;;  %v1821_v5 = vld [vmem:[#allocation5 + $0x1c0] sm:$0xff]   ;;  %v62_v11 = vpack.c.bf16 %v46_v9, %v46_v9  ;;  %v45_v13 = vld [vmem:[#allocation2 + $0x30] sm:$0xff] }
  0x31   :  { %1586 = vmatpush3.bf16.msra.mxu0 %v1782_v22  ;;  %v1822_v6 = vld [vmem:[#allocation5 + $0x100] sm:$0xff]   ;;  %v44_v8 = vld [vmem:[#allocation2 + $0x28] sm:$0xff]  ;;  %v61_v15 = vpack.c.bf16 %v45_v13, %v45_v13  ;;  %v1824_v16 = vld [vmem:[#allocation5 + $0x278] sm:$0xff]  }
  0x32   :  { %1608 = vmatpush3.bf16.msra.mxu1 %v1783_v23  ;;  %1587 = vmatprep.subr.bf16.mxu0 %v1784_v24  ;;  %v1823_v7 = vld [vmem:[#allocation5 + $0x180] sm:$0xff]   ;;  %v60_v10 = vpack.c.bf16 %v44_v8, %v44_v8  ;;  %v1825_v17 = vld [vmem:[#allocation5 + $0x2f8] sm:$0xff]   ;;  %v1828_v20 = vld [vmem:[#allocation5 + $0x270] sm:$0xff]  }
  0x33   :  { %1609 = vmatprep.subr.bf16.mxu1 %v1785_v25  ;;  %v43_v12 = vld [vmem:[#allocation2 + $0x20] sm:$0xff]  ;;  %v1826_v18 = vld [vmem:[#allocation5 + $0x238] sm:$0xff]   ;;  %v1829_v21 = vld [vmem:[#allocation5 + $0x2f0] sm:$0xff]  }
  0x34   :  { %v59_v14 = vpack.c.bf16 %v43_v12, %v43_v12  ;;  %v1827_v19 = vld [vmem:[#allocation5 + $0x2b8] sm:$0xff]   ;;  %v1830_v22 = vld [vmem:[#allocation5 + $0x230] sm:$0xff]   ;;  %v1832_v24 = vld [vmem:[#allocation5 + $0x268] sm:$0xff]  }
  0x35   :  { %1588 = vmatpush3.bf16.msra.mxu0 %v1786_v26  ;;  %v1831_v23 = vld [vmem:[#allocation5 + $0x2b0] sm:$0xff]   ;;  %v1833_v25 = vld [vmem:[#allocation5 + $0x2e8] sm:$0xff]   ;;  %v1840_v32 = vld [vmem:[#allocation5 + $0x258] sm:$0xff]  }
  0x36   :  { %1610 = vmatpush3.bf16.msra.mxu1 %v1787_v27  ;;  %1589 = vmatprep.subr.bf16.mxu0 %v1788_v28  ;;  %v1834_v26 = vld [vmem:[#allocation5 + $0x228] sm:$0xff]   ;;  %v1836_v28 = vld [vmem:[#allocation5 + $0x260] sm:$0xff]   ;;  %v1841_v33 = vld [vmem:[#allocation5 + $0x2d8] sm:$0xff]  }
  0x37   :  { %1611 = vmatprep.subr.bf16.mxu1 %v1789_v29  ;;  %v1835_v27 = vld [vmem:[#allocation5 + $0x2a8] sm:$0xff]   ;;  %v1837_v29 = vld [vmem:[#allocation5 + $0x2e0] sm:$0xff]   ;;  %v1842_v34 = vld [vmem:[#allocation5 + $0x218] sm:$0xff]  }
  0x38   :  { %v1843_v35 = vld [vmem:[#allocation5 + $0x298] sm:$0xff]   ;;  %v1844_v36 = vld [vmem:[#allocation5 + $0x250] sm:$0xff]  }
  0x39   :  { %1590 = vmatpush3.bf16.msra.mxu0 %v1790_v30  ;;  %v1838_v30 = vld [vmem:[#allocation5 + $0x220] sm:$0xff]   ;;  %v1846_v38 = vld [vmem:[#allocation5 + $0x210] sm:$0xff]   ;;  %v1872_v8 = vld [vmem:[#allocation5 + $0x358] sm:$0xff]  }
  0x3a   :  { %1612 = vmatpush3.bf16.msra.mxu1 %v1791_v31  ;;  %1619 = vmatprep.subr.bf16.mxu0 %v1792_v40  ;;  %v1839_v31 = vld [vmem:[#allocation5 + $0x2a0] sm:$0xff]   ;;  %v1848_v40 = vld [vmem:[#allocation5 + $0x248] sm:$0xff]   ;;  %v1873_v9 = vld [vmem:[#allocation5 + $0x3d8] sm:$0xff]  }
  0x3b   :  { %1641 = vmatprep.subr.bf16.mxu1 %v1793_v41  ;;  %v1849_v41 = vld [vmem:[#allocation5 + $0x2c8] sm:$0xff]   ;;  %v1876_v12 = vld [vmem:[#allocation5 + $0x350] sm:$0xff]  }
  0x3c   :  { %1128 = vmatmul.mubr.bf16.vlgmr.msra.gmra.mxu0 %v55_v37  ;;  %v1845_v37 = vld [vmem:[#allocation5 + $0x2d0] sm:$0xff]  }
  0x3d   :  { %1168 = vmatmul.mubr.bf16.vlgmr.msra.gmra.mxu1 %v57_v39  ;;  %1620 = vmatpush3.bf16.msra.mxu0 %v1794_v42  ;;  %v1847_v39 = vld [vmem:[#allocation5 + $0x290] sm:$0xff]   ;;  %v1850_v42 = vld [vmem:[#allocation5 + $0x208] sm:$0xff]  }
  0x3e   :  { %1642 = vmatpush3.bf16.msra.mxu1 %v1795_v43  ;;  %1621 = vmatprep.subr.bf16.mxu0 %v1796_v44  ;;  %v1851_v43 = vld [vmem:[#allocation5 + $0x288] sm:$0xff]   ;;  %v1852_v44 = vld [vmem:[#allocation5 + $0x240] sm:$0xff]   ;;  %v1877_v13 = vld [vmem:[#allocation5 + $0x3d0] sm:$0xff]  }
  0x3f   :  { %1643 = vmatprep.subr.bf16.mxu1 %v1797_v45  ;;  %1207 = vmatprep.mubr.bf16.mxu0 %v60_v10  ;;  %v1853_v45 = vld [vmem:[#allocation5 + $0x2c0] sm:$0xff]   ;;  %v1874_v10 = vld [vmem:[#allocation5 + $0x318] sm:$0xff]  }
  0x40   :  { %1247 = vmatprep.mubr.bf16.mxu1 %v62_v11  ;;  %v1875_v11 = vld [vmem:[#allocation5 + $0x398] sm:$0xff]  }
  0x41   :  { %1622 = vmatpush3.bf16.msra.mxu0 %v1798_v46  ;;  %v1854_v46 = vld [vmem:[#allocation5 + $0x200] sm:$0xff]  }
  0x42   :  { %1644 = vmatpush3.bf16.msra.mxu1 %v1799_v47  ;;  %1623 = vmatprep.subr.bf16.mxu0 %v1800_v48  ;;  %v1855_v47 = vld [vmem:[#allocation5 + $0x280] sm:$0xff]   ;;  %v48_v48 = vld [vmem:[#allocation2 + $0x48] sm:$0xff] }
  0x43   :  { %1645 = vmatprep.subr.bf16.mxu1 %v1801_v49  ;;  %v64_v49 = vpack.c.bf16 %v48_v48, %v48_v48 }
  0x45   :  { %1624 = vmatpush3.bf16.msra.mxu0 %v1802_v50  ;;  %v50_v50 = vld [vmem:[#allocation2 + $0x58] sm:$0xff] }
  0x46   :  { %1646 = vmatpush3.bf16.msra.mxu1 %v1803_v51  ;;  %1625 = vmatprep.subr.bf16.mxu0 %v1804_v52  ;;  %v47_v51 = vld [vmem:[#allocation2 + $0x40] sm:$0xff]  ;;  %v49_v52 = vld [vmem:[#allocation2 + $0x50] sm:$0xff] }
  0x47   :  { %1647 = vmatprep.subr.bf16.mxu1 %v1805_v53  ;;  %v66_v53 = vpack.c.bf16 %v50_v50, %v50_v50 }
  0x49   :  { %1626 = vmatpush3.bf16.msra.mxu0 %v1806_v54  ;;  %v63_v54 = vpack.c.bf16 %v47_v51, %v47_v51 }
  0x4a   :  { %1648 = vmatpush3.bf16.msra.mxu1 %v1807_v55  ;;  %1627 = vmatprep.subr.bf16.mxu0 %v1808_v56  ;;  %v65_v55 = vpack.c.bf16 %v49_v52, %v49_v52  ;;  %v1856_v56 = vld [vmem:[#allocation5 + $0x378] sm:$0xff]  }
  0x4b   :  { %1649 = vmatprep.subr.bf16.mxu1 %v1809_v57  ;;  %v1857_v57 = vld [vmem:[#allocation5 + $0x3f8] sm:$0xff]  }
  0x4d   :  { %1628 = vmatpush3.bf16.msra.mxu0 %v1810_v58  ;;  %v1858_v58 = vld [vmem:[#allocation5 + $0x338] sm:$0xff]  }
  0x4e   :  { %1650 = vmatpush3.bf16.msra.mxu1 %v1811_v59  ;;  %1629 = vmatprep.subr.bf16.mxu0 %v1812_v60  ;;  %v1859_v59 = vld [vmem:[#allocation5 + $0x3b8] sm:$0xff]   ;;  %v1860_v60 = vld [vmem:[#allocation5 + $0x370] sm:$0xff]  }
  0x4f   :  { %1651 = vmatprep.subr.bf16.mxu1 %v1813_v61  ;;  %v1861_v61 = vld [vmem:[#allocation5 + $0x3f0] sm:$0xff]  }
  0x51   :  { %1630 = vmatpush3.bf16.msra.mxu0 %v1814_v62  ;;  %v1862_v62 = vld [vmem:[#allocation5 + $0x330] sm:$0xff]  }
  0x52   :  { %1652 = vmatpush3.bf16.msra.mxu1 %v1815_v63  ;;  %1631 = vmatprep.subr.bf16.mxu0 %v1816_v0  ;;  %v1863_v63 = vld [vmem:[#allocation5 + $0x3b0] sm:$0xff]   ;;  %v1864_v0 = vld [vmem:[#allocation5 + $0x368] sm:$0xff]  }
  0x53   :  { %1653 = vmatprep.subr.bf16.mxu1 %v1817_v1  ;;  %v1865_v1 = vld [vmem:[#allocation5 + $0x3e8] sm:$0xff]  }
  0x55   :  { %1632 = vmatpush3.bf16.msra.mxu0 %v1818_v2  ;;  %v1866_v2 = vld [vmem:[#allocation5 + $0x328] sm:$0xff]  }
  0x56   :  { %1654 = vmatpush3.bf16.msra.mxu1 %v1819_v3  ;;  %1633 = vmatprep.subr.bf16.mxu0 %v1820_v4  ;;  %v1867_v3 = vld [vmem:[#allocation5 + $0x3a8] sm:$0xff]   ;;  %v1868_v4 = vld [vmem:[#allocation5 + $0x360] sm:$0xff]  }
  0x57   :  { %1655 = vmatprep.subr.bf16.mxu1 %v1821_v5  ;;  %v1869_v5 = vld [vmem:[#allocation5 + $0x3e0] sm:$0xff]  }
  0x59   :  { %1634 = vmatpush3.bf16.msra.mxu0 %v1822_v6  ;;  %v1870_v6 = vld [vmem:[#allocation5 + $0x320] sm:$0xff]  }
  0x5a   :  { %1656 = vmatpush3.bf16.msra.mxu1 %v1823_v7  ;;  %1663 = vmatprep.subr.bf16.mxu0 %v1824_v16  ;;  %v1871_v7 = vld [vmem:[#allocation5 + $0x3a0] sm:$0xff]   ;;  %v1880_v16 = vld [vmem:[#allocation5 + $0x348] sm:$0xff]  }
  0x5b   :  { %1685 = vmatprep.subr.bf16.mxu1 %v1825_v17  ;;  %v1881_v17 = vld [vmem:[#allocation5 + $0x3c8] sm:$0xff]  }
  0x5c   :  { %1208 = vmatmul.mubr.bf16.vlgmr.msra.gmra.mxu0 %v59_v14  ;;  %v1878_v14 = vld [vmem:[#allocation5 + $0x310] sm:$0xff]  }
  0x5d   :  { %1248 = vmatmul.mubr.bf16.vlgmr.msra.gmra.mxu1 %v61_v15  ;;  %1664 = vmatpush3.bf16.msra.mxu0 %v1826_v18  ;;  %v1879_v15 = vld [vmem:[#allocation5 + $0x390] sm:$0xff]   ;;  %v1882_v18 = vld [vmem:[#allocation5 + $0x308] sm:$0xff]  }
  0x5e   :  { %1686 = vmatpush3.bf16.msra.mxu1 %v1827_v19  ;;  %1665 = vmatprep.subr.bf16.mxu0 %v1828_v20  ;;  %v1883_v19 = vld [vmem:[#allocation5 + $0x388] sm:$0xff]   ;;  %v1884_v20 = vld [vmem:[#allocation5 + $0x340] sm:$0xff]  }
  0x5f   :  { %1687 = vmatprep.subr.bf16.mxu1 %v1829_v21  ;;  %1287 = vmatprep.mubr.bf16.mxu0 %v64_v49  ;;  %v1885_v21 = vld [vmem:[#allocation5 + $0x3c0] sm:$0xff]  }
  0x60   :  { %1327 = vmatprep.mubr.bf16.mxu1 %v66_v53 }
  0x61   :  { %1666 = vmatpush3.bf16.msra.mxu0 %v1830_v22  ;;  %v1886_v22 = vld [vmem:[#allocation5 + $0x300] sm:$0xff]  }
  0x62   :  { %1688 = vmatpush3.bf16.msra.mxu1 %v1831_v23  ;;  %1667 = vmatprep.subr.bf16.mxu0 %v1832_v24  ;;  %v1887_v23 = vld [vmem:[#allocation5 + $0x380] sm:$0xff]   ;;  %v52_v24 = vld [vmem:[#allocation2 + $0x68] sm:$0xff] }
  0x63   :  { %1689 = vmatprep.subr.bf16.mxu1 %v1833_v25  ;;  %v54_v25 = vld [vmem:[#allocation2 + $0x78] sm:$0xff] }
  0x65   :  { %1668 = vmatpush3.bf16.msra.mxu0 %v1834_v26  ;;  %v51_v26 = vld [vmem:[#allocation2 + $0x60] sm:$0xff] }
  0x66   :  { %1690 = vmatpush3.bf16.msra.mxu1 %v1835_v27  ;;  %1669 = vmatprep.subr.bf16.mxu0 %v1836_v28  ;;  %v68_v27 = vpack.c.bf16 %v52_v24, %v52_v24  ;;  %v70_v28 = vpack.c.bf16 %v54_v25, %v54_v25 }
  0x67   :  { %1691 = vmatprep.subr.bf16.mxu1 %v1837_v29  ;;  %v67_v29 = vpack.c.bf16 %v51_v26, %v51_v26 }
  0x69   :  { %1670 = vmatpush3.bf16.msra.mxu0 %v1838_v30  ;;  %v53_v30 = vld [vmem:[#allocation2 + $0x70] sm:$0xff] }
  0x6a   :  { %1692 = vmatpush3.bf16.msra.mxu1 %v1839_v31  ;;  %1671 = vmatprep.subr.bf16.mxu0 %v1840_v32  ;;  %v69_v31 = vpack.c.bf16 %v53_v30, %v53_v30 }
  0x6b   :  { %1693 = vmatprep.subr.bf16.mxu1 %v1841_v33 }
  0x6d   :  { %1672 = vmatpush3.bf16.msra.mxu0 %v1842_v34 }
  0x6e   :  { %1694 = vmatpush3.bf16.msra.mxu1 %v1843_v35  ;;  %1673 = vmatprep.subr.bf16.mxu0 %v1844_v36 }
  0x6f   :  { %1695 = vmatprep.subr.bf16.mxu1 %v1845_v37 }
  0x71   :  { %1674 = vmatpush3.bf16.msra.mxu0 %v1846_v38 }
  0x72   :  { %1696 = vmatpush3.bf16.msra.mxu1 %v1847_v39  ;;  %1675 = vmatprep.subr.bf16.mxu0 %v1848_v40 }
  0x73   :  { %1697 = vmatprep.subr.bf16.mxu1 %v1849_v41 }
  0x75   :  { %1676 = vmatpush3.bf16.msra.mxu0 %v1850_v42 }
  0x76   :  { %1698 = vmatpush3.bf16.msra.mxu1 %v1851_v43  ;;  %1677 = vmatprep.subr.bf16.mxu0 %v1852_v44 }
  0x77   :  { %1699 = vmatprep.subr.bf16.mxu1 %v1853_v45 }
  0x79   :  { %1678 = vmatpush3.bf16.msra.mxu0 %v1854_v46 }
  0x7a   :  { %1700 = vmatpush3.bf16.msra.mxu1 %v1855_v47  ;;  %1707 = vmatprep.subr.bf16.mxu0 %v1856_v56 }
  0x7b   :  { %1729 = vmatprep.subr.bf16.mxu1 %v1857_v57 }
  0x7c   :  { %1288 = vmatmul.mubr.bf16.vlgmr.msra.gmra.mxu0 %v63_v54 }
  0x7d   :  { %1328 = vmatmul.mubr.bf16.vlgmr.msra.gmra.mxu1 %v65_v55  ;;  %1708 = vmatpush3.bf16.msra.mxu0 %v1858_v58 }
  0x7e   :  { %1730 = vmatpush3.bf16.msra.mxu1 %v1859_v59  ;;  %1709 = vmatprep.subr.bf16.mxu0 %v1860_v60 }
  0x7f   :  { %1731 = vmatprep.subr.bf16.mxu1 %v1861_v61  ;;  %1367 = vmatprep.mubr.bf16.mxu0 %v68_v27 }
  0x80   :  { %1407 = vmatprep.mubr.bf16.mxu1 %v70_v28 }
  0x81   :  { %1710 = vmatpush3.bf16.msra.mxu0 %v1862_v62 }
  0x82   :  { %1732 = vmatpush3.bf16.msra.mxu1 %v1863_v63  ;;  %1711 = vmatprep.subr.bf16.mxu0 %v1864_v0 }
  0x83   :  { %1733 = vmatprep.subr.bf16.mxu1 %v1865_v1 }
  0x85   :  { %1712 = vmatpush3.bf16.msra.mxu0 %v1866_v2 }
  0x86   :  { %1734 = vmatpush3.bf16.msra.mxu1 %v1867_v3  ;;  %1713 = vmatprep.subr.bf16.mxu0 %v1868_v4 }
  0x87   :  { %1735 = vmatprep.subr.bf16.mxu1 %v1869_v5 }
  0x89   :  { %1714 = vmatpush3.bf16.msra.mxu0 %v1870_v6 }
  0x8a   :  { %1736 = vmatpush3.bf16.msra.mxu1 %v1871_v7  ;;  %1715 = vmatprep.subr.bf16.mxu0 %v1872_v8 }
  0x8b   :  { %1737 = vmatprep.subr.bf16.mxu1 %v1873_v9 }
  0x8d   :  { %1716 = vmatpush3.bf16.msra.mxu0 %v1874_v10 }
  0x8e   :  { %1738 = vmatpush3.bf16.msra.mxu1 %v1875_v11  ;;  %1717 = vmatprep.subr.bf16.mxu0 %v1876_v12 }
  0x8f   :  { %1739 = vmatprep.subr.bf16.mxu1 %v1877_v13 }
  0x91   :  { %1718 = vmatpush3.bf16.msra.mxu0 %v1878_v14 }
  0x92   :  { %1740 = vmatpush3.bf16.msra.mxu1 %v1879_v15  ;;  %1719 = vmatprep.subr.bf16.mxu0 %v1880_v16 }
  0x93   :  { %1741 = vmatprep.subr.bf16.mxu1 %v1881_v17 }
  0x95   :  { %1720 = vmatpush3.bf16.msra.mxu0 %v1882_v18 }
  0x96   :  { %1742 = vmatpush3.bf16.msra.mxu1 %v1883_v19  ;;  %1721 = vmatprep.subr.bf16.mxu0 %v1884_v20 }
  0x97   :  { %1743 = vmatprep.subr.bf16.mxu1 %v1885_v21 }
  0x99   :  { %1722 = vmatpush3.bf16.msra.mxu0 %v1886_v22 }
  0x9a   :  { %1744 = vmatpush3.bf16.msra.mxu1 %v1887_v23 }
  0x9c   :  { %1368 = vmatmul.mubr.bf16.vlgmr.msra.gmra.mxu0 %v67_v29 }
  0x9d   :  { %1408 = vmatmul.mubr.bf16.vlgmr.msra.gmra.mxu1 %v69_v31 }
  0xfc   :  { %v1591_v32 = vpop.f32.mrf.mxu0 }
  0xfd   :  { %v1613_v33 = vpop.f32.mrf.mxu1 }
  0xfe   :  { %v1592_v34 = vpop.f32.mrf.mxu0 }
  0xff   :  { %v1614_v35 = vpop.f32.mrf.mxu1  ;;  %v1593_v36 = vadd.f32 %v1592_v34, %v1591_v32 }
 0x100   :  { %v1615_v37 = vadd.f32 %v1614_v35, %v1613_v33  ;;  %v1594_v38 = vpop.f32.mrf.mxu0 }
 0x101   :  { %v1616_v39 = vpop.f32.mrf.mxu1 }
 0x102   :  { %v1170_v40 = vadd.f32 %v1615_v37, %v1593_v36  ;;  %v1595_v41 = vpop.f32.mrf.mxu0 }
 0x103   :  { %v1617_v42 = vpop.f32.mrf.mxu1 }
 0x11c   :  { %v1635_v43 = vpop.f32.mrf.mxu0 }
 0x11d   :  { %v1657_v44 = vpop.f32.mrf.mxu1 }
 0x11e   :  { %v1636_v45 = vpop.f32.mrf.mxu0 }
 0x11f   :  { %v1658_v46 = vpop.f32.mrf.mxu1  ;;  %v1637_v59 = vadd.f32 %v1636_v45, %v1635_v43 }
 0x120   :  { %v1638_v47 = vpop.f32.mrf.mxu0  ;;  %v1659_v61 = vadd.f32 %v1658_v46, %v1657_v44 }
 0x121   :  { %v1660_v48 = vpop.f32.mrf.mxu1  ;;  %v1210_v60 = vadd.f32 %v1637_v59, %v1170_v40 }
 0x122   :  { %v1639_v49 = vpop.f32.mrf.mxu0 }
 0x123   :  { %v1661_v50 = vpop.f32.mrf.mxu1  ;;  %v1250_v63 = vadd.f32 %v1659_v61, %v1210_v60 }
 0x13c   :  { %v1679_v51 = vpop.f32.mrf.mxu0 }
 0x13d   :  { %v1701_v52 = vpop.f32.mrf.mxu1 }
 0x13e   :  { %v1680_v53 = vpop.f32.mrf.mxu0 }
 0x13f   :  { %v1702_v54 = vpop.f32.mrf.mxu1  ;;  %v1681_v62 = vadd.f32 %v1680_v53, %v1679_v51 }
 0x140   :  { %v1682_v55 = vpop.f32.mrf.mxu0  ;;  %v1703_v1 = vadd.f32 %v1702_v54, %v1701_v52 }
 0x141   :  { %v1704_v56 = vpop.f32.mrf.mxu1  ;;  %v1290_v0 = vadd.f32 %v1681_v62, %v1250_v63 }
 0x142   :  { %v1683_v57 = vpop.f32.mrf.mxu0 }
 0x143   :  { %v1705_v58 = vpop.f32.mrf.mxu1  ;;  %v1330_v6 = vadd.f32 %v1703_v1, %v1290_v0 }
 0x15c   :  { %v1723_v2 = vpop.f32.mrf.mxu0 }
 0x15d   :  { %v1745_v3 = vpop.f32.mrf.mxu1 }
 0x15e   :  { %v1724_v4 = vpop.f32.mrf.mxu0 }
 0x15f   :  { %v1746_v5 = vpop.f32.mrf.mxu1  ;;  %v1725_v7 = vadd.f32 %v1724_v4, %v1723_v2 }
 0x160   :  { %v1726_v8 = vpop.f32.mrf.mxu0  ;;  %v1747_v11 = vadd.f32 %v1746_v5, %v1745_v3 }
 0x161   :  { %v1748_v9 = vpop.f32.mrf.mxu1  ;;  %v1370_v10 = vadd.f32 %v1725_v7, %v1330_v6 }
 0x162   :  { %v1727_v12 = vpop.f32.mrf.mxu0 }
 0x163   :  { %v1749_v13 = vpop.f32.mrf.mxu1  ;;  %v1410_v14 = vadd.f32 %v1747_v11, %v1370_v10 }
 0x165   :  { %v1415_v15 = vmul.f32 %v1410_v14, %v1410_v14 }
 0x167   :  { %1416 = vadd.xlane.f32.xlu0 %v1415_v15 }
 0x1f0   :  { %v1417_v16 = vpop.xlane.xlu0 %1416 }
 0x1f1   :  { %v1418_v17 = vrot.slane %v1417_v16, 4 }
 0x1f3   :  { %v1419_v18 = vadd.f32 %v1418_v17, %v1417_v16 }
 0x1f5   :  { %v1420_v19 = vrot.slane %v1419_v18, 2 }
 0x1f7   :  { %v1421_v20 = vadd.f32 %v1420_v19, %v1419_v18 }
 0x1f9   :  { %v1422_v21 = vrot.slane %v1421_v20, 1 }
 0x1fb   :  { %v1423_v22 = vadd.f32 %v1422_v21, %v1421_v20 }
 0x1fd   :  { %1751 = vpush %v1423_v22 }
 0x22e   :  { %s1752_s0 = spop %1751 }
 0x22f   :  { %v1425_v23 = vstv %s1752_s0 }
 0x230   :  { %1888 = vrsqrt.f32 %v1425_v23 }
 0x23d   :  { %v1889_v24 = vpop.eup %1888 }
 0x23e   :  { %1753 = vpush %v1889_v24 }
 0x26f   :  { %s1754_s22 = spop %1753 }
 0x270   :  { %v1428_v25 = vstv %s1754_s22 }
 0x271   :  { %v1429_v26 = vmul.f32 %v1428_v25, %v1410_v14 }
 0x273   :  { %1430 = vst [vmem:[#allocation7] sm:$0xff] %v1429_v26 }
 0x274   :  { %1941 = shalt.err (!%p1938_p0)
}
 0x275   :  { %1440 = dma.vmem_to_hbm [thread:$0]  %s1438_s21, 128, %s1987_s2, [#allocation4]  }
 0x276   :  { %1954 = dma.done.wait [#allocation4], 128  }
 0x277   :  { %1955 = vsyncadd [#allocation4], 4294967168 }
 0x278   :  { %1444 = vsyncpa [#allocation3], 1 }
 0x279   :  { %1445 = vsyncpa [#allocation6], 1 }
 0x27a   :  { %1446 = vsyncpa [#allocation4], 1 }

</bundles_post_ra>
